<compile_context>
chip_gen: v5e
topology: v5e:2x2
jax: 0.10.0
libtpu: 0.0.40
codegen_flags: <defaults>
</compile_context>

<pallas_src>
import jax
import jax.numpy as jnp
from jax.experimental import pallas as pl
from jax.experimental.pallas import tpu as pltpu


def _unbind_kernel(x_ref, *o_refs):
    # x_ref: (tb, C*HW) input tile; o_refs[c]: (tb, HW) output tile.
    # Each read is a static, lane-aligned slice; each store is a full,
    # unmasked (tb, HW) tile write.
    hw = o_refs[0].shape[-1]
    for c, o_ref in enumerate(o_refs):
        o_ref[...] = x_ref[:, c * hw:(c + 1) * hw]


def _vmem_budget_and_cap():
    # Generation-aware VMEM sizing: 128 MiB per core on v5e/v6e, 64 MiB on v7x.
    # Use roughly half for the double-buffered tiles, keep headroom on the
    # declared limit, and fall back conservatively if the query is unavailable.
    try:
        cap = int(pltpu.get_tpu_info().vmem_capacity_bytes)
    except Exception:
        cap = 64 * 1024 * 1024  # safe on all current generations
    tile_budget = max(cap // 2 - (4 << 20), 8 << 20)
    vmem_cap = max(cap - (8 << 20), 16 << 20)
    return tile_budget, vmem_cap


def _pick_tb(B, C, HW, itemsize, tile_budget):
    """Rows of B per grid step. Returns None if even a minimal tile won't fit."""
    sub = max(8, 32 // itemsize)            # dtype-native sublane packing (8/16/32)
    bytes_per_row = 4 * C * HW * itemsize   # input + outputs, double-buffered
    tb = tile_budget // bytes_per_row
    total_bytes = B * C * HW * itemsize
    if tb >= B:
        # Whole-B tile fits. For non-trivial sizes keep >= ~4 grid steps so both
        # v7x TensorCores / DMA streams get work and DMA-in/out overlaps.
        if total_bytes >= (4 << 20) and B >= 4 * sub:
            return ((B // 4) // sub) * sub
        return B                            # full dim: always a legal block size
    tb = (tb // sub) * sub
    return tb if tb > 0 else None


@jax.jit
def unbind_axis1(x):
    """Equivalent of torch.unbind(x, 1): tuple of x.shape[1] arrays of shape (B, H, W)."""
    B, C, H, W = x.shape
    HW = H * W
    itemsize = jnp.dtype(x.dtype).itemsize

    tile_budget, vmem_cap = _vmem_budget_and_cap()
    tb = _pick_tb(B, C, HW, itemsize, tile_budget)

    if tb is None:
        # TODO(synk): a single (C*HW) row exceeds the VMEM tile budget; a
        # production kernel would split channels into the grid. Fall back to
        # plain XLA slicing for correctness on such extreme shapes.
        return tuple(x[:, c, :, :] for c in range(C))

    # Free view; channel offsets become lane-aligned slices of the last axis.
    x2 = x.reshape(B, C * HW)
    nb = pl.cdiv(B, tb)

    tile_bytes = 4 * tb * C * HW * itemsize  # in + out tiles, double-buffered
    vmem_limit = int(min(vmem_cap, max(16 << 20, tile_bytes + (4 << 20))))

    outs = pl.pallas_call(
        _unbind_kernel,
        out_shape=tuple(jax.ShapeDtypeStruct((B, HW), x.dtype) for _ in range(C)),
        grid=(nb,),
        in_specs=[pl.BlockSpec((tb, C * HW), lambda i: (i, 0))],
        out_specs=tuple(pl.BlockSpec((tb, HW), lambda i: (i, 0)) for _ in range(C)),
        compiler_params=pltpu.CompilerParams(
            dimension_semantics=("parallel",),
            vmem_limit_bytes=vmem_limit,
        ),
    )(x2)

    # Trailing-axis reshape of each contiguous output is free.
    return tuple(o.reshape(B, H, W) for o in outs)


if __name__ == "__main__":
    key = jax.random.PRNGKey(0)
    x = jax.random.normal(key, (2, 4, 16, 16), dtype=jnp.float32)

    outs = unbind_axis1(x)
    outs = jax.block_until_ready(outs)

    # Verify against plain-JAX reference semantics of torch.unbind(x, 1).
    assert isinstance(outs, tuple) and len(outs) == x.shape[1]
    for c, o in enumerate(outs):
        assert o.shape == (2, 16, 16)
        assert o.dtype == x.dtype
        ref = x[:, c, :, :]
        assert jnp.allclose(o, ref), f"mismatch on slice {c}"

    print("KERNEL_OK")
</pallas_src>

<mosaic_0001>
module attributes {stable_mosaic.version = 11 : i64} {
  func.func @_unbind_kernel(%arg0: i32, %arg1: memref<2x1024xf32, #tpu.memory_space<vmem>>, %arg2: memref<2x256xf32, #tpu.memory_space<vmem>>, %arg3: memref<2x256xf32, #tpu.memory_space<vmem>>, %arg4: memref<2x256xf32, #tpu.memory_space<vmem>>, %arg5: memref<2x256xf32, #tpu.memory_space<vmem>>) attributes {dimension_semantics = [#tpu.dimension_semantics<parallel>], iteration_bounds = array<i64: 1>, scalar_prefetch = 0 : i64, scratch_operands = 0 : i64, tpu.core_type = #tpu.core_type<tc>, window_params = [{transform_indices = @transform_0, window_bounds = array<i64: 2, 1024>}, {transform_indices = @transform_1, window_bounds = array<i64: 2, 256>}, {transform_indices = @transform_2, window_bounds = array<i64: 2, 256>}, {transform_indices = @transform_3, window_bounds = array<i64: 2, 256>}, {transform_indices = @transform_4, window_bounds = array<i64: 2, 256>}]} {
    %c0 = arith.constant 0 : index
    %c0_0 = arith.constant 0 : index
    %0 = vector.load %arg1[%c0, %c0_0] : memref<2x1024xf32, #tpu.memory_space<vmem>>, vector<2x256xf32>
    %c0_1 = arith.constant 0 : index
    %c0_2 = arith.constant 0 : index
    %1 = vector.load %arg2[%c0_1, %c0_2] : memref<2x256xf32, #tpu.memory_space<vmem>>, vector<2x256xf32>
    tpu.vector_store %arg2[%c0_1, %c0_2], %0 {strides = array<i32>} : memref<2x256xf32, #tpu.memory_space<vmem>>, vector<2x256xf32>,
    %c0_3 = arith.constant 0 : index
    %c256 = arith.constant 256 : index
    %2 = vector.load %arg1[%c0_3, %c256] : memref<2x1024xf32, #tpu.memory_space<vmem>>, vector<2x256xf32>
    %c0_4 = arith.constant 0 : index
    %c0_5 = arith.constant 0 : index
    %3 = vector.load %arg3[%c0_4, %c0_5] : memref<2x256xf32, #tpu.memory_space<vmem>>, vector<2x256xf32>
    tpu.vector_store %arg3[%c0_4, %c0_5], %2 {strides = array<i32>} : memref<2x256xf32, #tpu.memory_space<vmem>>, vector<2x256xf32>,
    %c0_6 = arith.constant 0 : index
    %c512 = arith.constant 512 : index
    %4 = vector.load %arg1[%c0_6, %c512] : memref<2x1024xf32, #tpu.memory_space<vmem>>, vector<2x256xf32>
    %c0_7 = arith.constant 0 : index
    %c0_8 = arith.constant 0 : index
    %5 = vector.load %arg4[%c0_7, %c0_8] : memref<2x256xf32, #tpu.memory_space<vmem>>, vector<2x256xf32>
    tpu.vector_store %arg4[%c0_7, %c0_8], %4 {strides = array<i32>} : memref<2x256xf32, #tpu.memory_space<vmem>>, vector<2x256xf32>,
    %c0_9 = arith.constant 0 : index
    %c768 = arith.constant 768 : index
    %6 = vector.load %arg1[%c0_9, %c768] : memref<2x1024xf32, #tpu.memory_space<vmem>>, vector<2x256xf32>
    %c0_10 = arith.constant 0 : index
    %c0_11 = arith.constant 0 : index
    %7 = vector.load %arg5[%c0_10, %c0_11] : memref<2x256xf32, #tpu.memory_space<vmem>>, vector<2x256xf32>
    tpu.vector_store %arg5[%c0_10, %c0_11], %6 {strides = array<i32>} : memref<2x256xf32, #tpu.memory_space<vmem>>, vector<2x256xf32>,
    return
  }
  func.func @transform_0(%arg0: i32) -> (i32, i32) {
    %c0_i32 = arith.constant 0 : i32
    %c0_i32_0 = arith.constant 0 : i32
    return %arg0, %c0_i32 : i32, i32
  }
  func.func @transform_1(%arg0: i32) -> (i32, i32) {
    %c0_i32 = arith.constant 0 : i32
    %c0_i32_0 = arith.constant 0 : i32
    return %arg0, %c0_i32 : i32, i32
  }
  func.func @transform_2(%arg0: i32) -> (i32, i32) {
    %c0_i32 = arith.constant 0 : i32
    %c0_i32_0 = arith.constant 0 : i32
    return %arg0, %c0_i32 : i32, i32
  }
  func.func @transform_3(%arg0: i32) -> (i32, i32) {
    %c0_i32 = arith.constant 0 : i32
    %c0_i32_0 = arith.constant 0 : i32
    return %arg0, %c0_i32 : i32, i32
  }
  func.func @transform_4(%arg0: i32) -> (i32, i32) {
    %c0_i32 = arith.constant 0 : i32
    %c0_i32_0 = arith.constant 0 : i32
    return %arg0, %c0_i32 : i32, i32
  }
}

</mosaic_0001>

<bundles_post_ra>
// kernel: unbind_axis1.1
= control target key start
LH: loop header
LB: loop body
LE: loop exit
PB: predicated region body
PF: predicated region fallthrough
CT: control target
= control target key end

     0   :  { %s85_s0 = inlined_call_operand.vmem [shape: f32[2,1024], index: 0, kind: input, shape index: {}]   ;;  %s86_s1 = inlined_call_operand.vmem [shape: f32[2,256], index: 1, kind: output, shape index: {0}]   ;;  %s87_s2 = inlined_call_operand.vmem [shape: f32[2,256], index: 2, kind: output, shape index: {1}]   ;;  %s88_s3 = inlined_call_operand.vmem [shape: f32[2,256], index: 3, kind: output, shape index: {2}]   ;;  %s89_s4 = inlined_call_operand.vmem [shape: f32[2,256], index: 4, kind: output, shape index: {3}]  }
   0x1   :  { %v12_v0 = vld [vmem:[%s85_s0] sm:$0xf]  ;;  %v14_v1 = vld [vmem:[%s85_s0 + $0x4] sm:$0xf]  ;;  %v16_v2 = vld [vmem:[%s85_s0 + $0x8] sm:$0xf] }
   0x2   :  { %13 = vst [vmem:[%s86_s1] sm:$0xf] %v12_v0  ;;  %v18_v3 = vld [vmem:[%s85_s0 + $0xc] sm:$0xf] }
   0x3   :  { %15 = vst [vmem:[%s87_s2] sm:$0xf] %v14_v1 }
   0x4   :  { %17 = vst [vmem:[%s88_s3] sm:$0xf] %v16_v2 }
   0x5   :  { %19 = vst [vmem:[%s89_s4] sm:$0xf] %v18_v3 }

</bundles_post_ra>
